<compile_context>
chip_gen: v5e
topology: v5e:2x2
jax: 0.10.0
libtpu: 0.0.40
codegen_flags: <defaults>
</compile_context>

<pallas_src>
import jax
import jax.numpy as jnp
from jax.experimental import pallas as pl
from jax.experimental.pallas import tpu as pltpu


def actor_kernel(x_ref, w1_ref, b1_ref, w2_ref, b2_ref, mean_ref):
    # First linear + tanh: MXU matmul with f32 accumulation, bias add on VPU,
    # tanh on the EUP.
    h = jnp.dot(x_ref[...], w1_ref[...], preferred_element_type=jnp.float32)
    h = jnp.tanh(h + b1_ref[...])            # b1 is (1, H), broadcasts over batch tile
    # Mean head.
    mean = jnp.dot(h, w2_ref[...], preferred_element_type=jnp.float32)
    mean = mean + b2_ref[...]                # b2 is (1, O)
    mean_ref[...] = mean.astype(mean_ref.dtype)


def actor_forward(x, w1, b1, w2, b2, *, tb=512):
    """Returns (mean, log_std, std) matching the PyTorch Actor.forward()."""
    B, K = x.shape
    H = w1.shape[1]
    O = w2.shape[1]

    # Batch tile: multiple of 8 (sublane granularity), capped at `tb`.
    TB = min(tb, max(8, ((B + 7) // 8) * 8))
    Bp = ((B + TB - 1) // TB) * TB
    if Bp != B:
        x = jnp.pad(x, ((0, Bp - B), (0, 0)))
    grid = (Bp // TB,)

    # Weights / biases: constant index_map -> single DMA, VMEM-resident across
    # all batch tiles. x / mean are blocked over batch so BlockSpec double-buffering
    # overlaps HBM traffic with compute for large batches.
    resident = lambda a: pl.BlockSpec(a.shape, lambda i: tuple(0 for _ in a.shape))

    mean_p = pl.pallas_call(
        actor_kernel,
        out_shape=jax.ShapeDtypeStruct((Bp, O), jnp.float32),
        grid=grid,
        in_specs=[
            pl.BlockSpec((TB, K), lambda i: (i, 0)),
            resident(w1),
            resident(b1),
            resident(w2),
            resident(b2),
        ],
        out_specs=pl.BlockSpec((TB, O), lambda i: (i, 0)),
        compiler_params=pltpu.CompilerParams(
            dimension_semantics=("parallel",),
        ),
    )(x, w1, b1, w2, b2)

    mean = mean_p[:B]
    # Constants: zero log_std and std = exp(0) = 1. Computed outside the kernel so
    # no extra output DMA streams are needed; XLA folds these.
    log_std = jnp.zeros_like(mean)
    std = jnp.ones_like(mean)
    return mean, log_std, std


def init_actor_params(key, input_dim, hidden_dim, output_dim, dtype=jnp.float32):
    """Deterministic init mirroring nn.Linear defaults + the Actor's in-place scaling."""
    k1, k2, k3, k4 = jax.random.split(key, 4)
    bound1 = 1.0 / jnp.sqrt(input_dim)
    w1 = jax.random.uniform(k1, (input_dim, hidden_dim), dtype, -bound1, bound1)
    b1 = jax.random.uniform(k2, (1, hidden_dim), dtype, -bound1, bound1)
    bound2 = 1.0 / jnp.sqrt(hidden_dim)
    w2 = jax.random.uniform(k3, (hidden_dim, output_dim), dtype, -bound2, bound2) * 0.1
    b2 = jax.random.uniform(k4, (1, output_dim), dtype, -bound2, bound2) * 0.0
    return w1, b1, w2, b2


if __name__ == "__main__":
    input_dim, hidden_dim, output_dim = 16, 32, 8

    key = jax.random.PRNGKey(0)
    kx, kp = jax.random.split(key)
    w1, b1, w2, b2 = init_actor_params(kp, input_dim, hidden_dim, output_dim)

    # --- Small batch (matches the module spec scale; exercises the padded path) ---
    batch = 2
    x = jax.random.normal(kx, (batch, input_dim), dtype=jnp.float32)
    mean, log_std, std = actor_forward(x, w1, b1, w2, b2)
    jax.block_until_ready((mean, log_std, std))

    h_ref = jnp.tanh(x @ w1 + b1)
    mean_ref = h_ref @ w2 + b2
    assert mean.shape == (batch, output_dim)
    assert jnp.allclose(mean, mean_ref, atol=1e-5, rtol=1e-5)
    assert jnp.all(log_std == 0.0)
    assert jnp.all(std == 1.0)

    # --- Larger batch with >1 grid steps (exercises the tiled / pipelined path) ---
    batch2 = 64
    x2 = jax.random.normal(jax.random.PRNGKey(1), (batch2, input_dim), dtype=jnp.float32)
    mean2, log_std2, std2 = actor_forward(x2, w1, b1, w2, b2, tb=32)  # grid = (2,)
    jax.block_until_ready((mean2, log_std2, std2))

    mean2_ref = jnp.tanh(x2 @ w1 + b1) @ w2 + b2
    assert jnp.allclose(mean2, mean2_ref, atol=1e-5, rtol=1e-5)
    assert jnp.all(log_std2 == 0.0)
    assert jnp.all(std2 == 1.0)

    print("KERNEL_OK")
</pallas_src>

<mosaic_0001>
module attributes {stable_mosaic.version = 11 : i64} {
  func.func @actor_kernel(%arg0: i32, %arg1: memref<8x16xf32, #tpu.memory_space<vmem>>, %arg2: memref<16x32xf32, #tpu.memory_space<vmem>>, %arg3: memref<1x32xf32, #tpu.memory_space<vmem>>, %arg4: memref<32x8xf32, #tpu.memory_space<vmem>>, %arg5: memref<1x8xf32, #tpu.memory_space<vmem>>, %arg6: memref<8x8xf32, #tpu.memory_space<vmem>>) attributes {dimension_semantics = [#tpu.dimension_semantics<parallel>], iteration_bounds = array<i64: 1>, scalar_prefetch = 0 : i64, scratch_operands = 0 : i64, tpu.core_type = #tpu.core_type<tc>, window_params = [{transform_indices = @transform_0, window_bounds = array<i64: 8, 16>}, {pipeline_mode = #tpu.pipeline_mode<synchronous>, transform_indices = @transform_1, window_bounds = array<i64: 16, 32>}, {pipeline_mode = #tpu.pipeline_mode<synchronous>, transform_indices = @transform_2, window_bounds = array<i64: 1, 32>}, {pipeline_mode = #tpu.pipeline_mode<synchronous>, transform_indices = @transform_3, window_bounds = array<i64: 32, 8>}, {pipeline_mode = #tpu.pipeline_mode<synchronous>, transform_indices = @transform_4, window_bounds = array<i64: 1, 8>}, {transform_indices = @transform_5, window_bounds = array<i64: 8, 8>}]} {
    %c0 = arith.constant 0 : index
    %c0_0 = arith.constant 0 : index
    %0 = vector.load %arg1[%c0, %c0_0] : memref<8x16xf32, #tpu.memory_space<vmem>>, vector<8x16xf32>
    %c0_1 = arith.constant 0 : index
    %c0_2 = arith.constant 0 : index
    %1 = vector.load %arg2[%c0_1, %c0_2] : memref<16x32xf32, #tpu.memory_space<vmem>>, vector<16x32xf32>
    %cst = arith.constant dense<0.000000e+00> : vector<8x32xf32>
    %2 = tpu.matmul %0, %1, %cst {dimension_numbers = #tpu.dot_dimension_numbers<[1], [0], [0], [1], [0, 0, 1, 1], [], []>} : vector<8x16xf32>, vector<16x32xf32>, vector<8x32xf32> -> vector<8x32xf32>
    %c0_3 = arith.constant 0 : index
    %c0_4 = arith.constant 0 : index
    %3 = vector.load %arg3[%c0_3, %c0_4] : memref<1x32xf32, #tpu.memory_space<vmem>>, vector<1x32xf32>
    %4 = vector.broadcast %3 : vector<1x32xf32> to vector<8x32xf32>
    %5 = arith.addf %2, %4 : vector<8x32xf32>
    %6 = math.tanh %5 : vector<8x32xf32>
    %c0_5 = arith.constant 0 : index
    %c0_6 = arith.constant 0 : index
    %7 = vector.load %arg4[%c0_5, %c0_6] : memref<32x8xf32, #tpu.memory_space<vmem>>, vector<32x8xf32>
    %cst_7 = arith.constant dense<0.000000e+00> : vector<8x8xf32>
    %8 = tpu.matmul %6, %7, %cst_7 {dimension_numbers = #tpu.dot_dimension_numbers<[1], [0], [0], [1], [0, 0, 1, 1], [], []>} : vector<8x32xf32>, vector<32x8xf32>, vector<8x8xf32> -> vector<8x8xf32>
    %c0_8 = arith.constant 0 : index
    %c0_9 = arith.constant 0 : index
    %9 = vector.load %arg5[%c0_8, %c0_9] : memref<1x8xf32, #tpu.memory_space<vmem>>, vector<1x8xf32>
    %10 = vector.broadcast %9 : vector<1x8xf32> to vector<8x8xf32>
    %11 = arith.addf %8, %10 : vector<8x8xf32>
    %c0_10 = arith.constant 0 : index
    %c0_11 = arith.constant 0 : index
    %12 = vector.load %arg6[%c0_10, %c0_11] : memref<8x8xf32, #tpu.memory_space<vmem>>, vector<8x8xf32>
    tpu.vector_store %arg6[%c0_10, %c0_11], %11 {strides = array<i32>} : memref<8x8xf32, #tpu.memory_space<vmem>>, vector<8x8xf32>,
    return
  }
  func.func @transform_0(%arg0: i32) -> (i32, i32) {
    %c0_i32 = arith.constant 0 : i32
    %c0_i32_0 = arith.constant 0 : i32
    return %arg0, %c0_i32 : i32, i32
  }
  func.func @transform_1(%arg0: i32) -> (i32, i32) {
    %c0_i32 = arith.constant 0 : i32
    %c0_i32_0 = arith.constant 0 : i32
    %c0_i32_1 = arith.constant 0 : i32
    return %c0_i32, %c0_i32_0 : i32, i32
  }
  func.func @transform_2(%arg0: i32) -> (i32, i32) {
    %c0_i32 = arith.constant 0 : i32
    %c0_i32_0 = arith.constant 0 : i32
    %c0_i32_1 = arith.constant 0 : i32
    return %c0_i32, %c0_i32_0 : i32, i32
  }
  func.func @transform_3(%arg0: i32) -> (i32, i32) {
    %c0_i32 = arith.constant 0 : i32
    %c0_i32_0 = arith.constant 0 : i32
    %c0_i32_1 = arith.constant 0 : i32
    return %c0_i32, %c0_i32_0 : i32, i32
  }
  func.func @transform_4(%arg0: i32) -> (i32, i32) {
    %c0_i32 = arith.constant 0 : i32
    %c0_i32_0 = arith.constant 0 : i32
    %c0_i32_1 = arith.constant 0 : i32
    return %c0_i32, %c0_i32_0 : i32, i32
  }
  func.func @transform_5(%arg0: i32) -> (i32, i32) {
    %c0_i32 = arith.constant 0 : i32
    %c0_i32_0 = arith.constant 0 : i32
    return %arg0, %c0_i32 : i32, i32
  }
}

</mosaic_0001>

<bundles_post_ra>
// kernel: tpu_custom_call.1
= control target key start
LH: loop header
LB: loop body
LE: loop exit
PB: predicated region body
PF: predicated region fallthrough
CT: control target
= control target key end

     0   :  { %vm28_vm0 = vcmask 130048   ;;  %s197_s0 = inlined_call_operand.vmem [shape: f32[8,16], index: 0, kind: input, shape index: {}]   ;;  %s198_s1 = inlined_call_operand.vmem [shape: f32[16,32], index: 1, kind: input, shape index: {}]   ;;  %s199_s2 = inlined_call_operand.vmem [shape: f32[1,32], index: 2, kind: input, shape index: {}]   ;;  %s200_s3 = inlined_call_operand.vmem [shape: f32[32,8], index: 3, kind: input, shape index: {}]   ;;  %s201_s4 = inlined_call_operand.vmem [shape: f32[1,8], index: 4, kind: input, shape index: {}]   ;;  %s202_s5 = inlined_call_operand.hbm [shape: f32[8,8], index: 5, kind: output, shape index: {}]  }
   0x1   :  { %v23_v0 = vld [vmem:[%s198_s1 + $0x8] sm:$0xff]  ;;  %v22_v1 = vld [vmem:[%s198_s1] sm:$0xff] }
   0x2   :  { %46 = vmatpush.msra.mxu0 %v23_v0  ;;  %v21_v2 = vld [vmem:[%s197_s0] sm:$0xff] }
   0x3   :  { %10 = vsyncpa [#allocation3], 0  ;;  %v56_v3 = vld [vmem:[%s200_s3 + $0x18] sm:$0xff]  ;;  %v55_v4 = vld [vmem:[%s200_s3 + $0x10] sm:$0xff]  ;;  %vm61_vm1 = vcmask 261120   ;;  %s136_s9 = smov [#allocation2]  }
   0x4   :  { %47 = vmatpush.msra.mxu0 %v22_v1  ;;  %77 = vmatpush.msra.mxu1 %v56_v3  ;;  %v54_v5 = vld [vmem:[%s200_s3 + $0x8] sm:$0xff]  ;;  %v53_v6 = vld [vmem:[%s200_s3] sm:$0xff]  ;;  %s92_s10 = sshll.u32 %s136_s9, 4  ;;  %s94_s12 = sshll.u32 %s202_s5, 4  ;;  %vm85_vm2 = vcmask 64512   ;;  %s93_s10 = int_to_ptr.vmem [resolvable:$true] %s92_s10  ;;  %s95_s12 = int_to_ptr.hbm [resolvable:$true] %s94_s12 }
   0x5   :  { %103 = vmatmul.msk.f32.vlgmr.msra.gmra.mxu0 %vm28_vm0, %v21_v2  ;;  %v106_v7 = vld [vmem:[%s199_s2] ss:$0 sm:$0xff] }
   0x6   :  { %78 = vmatpush.msra.mxu1 %v55_v4  ;;  %v107_v11 = vld [vmem:[%s201_s4] ss:$0 sm:$0xff] }
   0x8   :  { %79 = vmatpush.msra.mxu1 %v54_v5 }
   0xa   :  { %80 = vmatpush.msra.mxu1 %v53_v6 }
  0x82   :  { %v49_v8 = vpop.f32.mrf.mxu0 }
  0x83   :  { %v50_v9 = vadd.f32 %v106_v7, %v49_v8 }
  0x85   :  { %108 = vtanh.f32 %v50_v9 }
  0x8b   :  { %v109_v10 = vpop.eup %108 }
  0x8c   :  { %104 = vmatmul.msk.f32.vlgmr.msra.gmra.mxu1 %vm61_vm1, %v109_v10 }
 0x109   :  { %v82_v12 = vpop.f32.mrf.mxu1 }
 0x10a   :  { %v83_v13 = vadd.f32 %v107_v11, %v82_v12 }
 0x10c   :  { %86 = vst.msk [vmem:[#allocation2] sm:$0xff] %vm85_vm2, %v83_v13 }
 0x10d   :  { %97 = dma.vmem_to_hbm [thread:$0]  %s93_s10, 128, %s95_s12, [#allocation3]  }
 0x10e   :  { %134 = dma.done.wait [#allocation3], 128  }
 0x10f   :  { %135 = vsyncadd [#allocation3], 4294967168 }
 0x110   :  { %102 = vsyncpa [#allocation3], 1 }

</bundles_post_ra>
